<compile_context>
chip_gen: v5e
topology: v5e:2x2
jax: 0.10.0
libtpu: 0.0.40
codegen_flags: <defaults>
</compile_context>

<pallas_src>
import jax
import jax.numpy as jnp
from jax.experimental import pallas as pl
from jax.experimental.pallas import tpu as pltpu

# ---------------- model hyper-parameters (small, synthetic) ----------------
VOCAB_SIZE = 64          # len(chars) in the original script (synthetic here)
CONTEXT_SIZE = 2
EMBED_DIM = 32
HIDDEN_DIM = 128         # fixed at 128 in the reference module
V_PAD = 128              # vocab padded to a full lane width
TILE_B = 128             # batch tile (MXU M dim); 256 also works on v6e/v7x


def ngram_kernel(ids_ref, emb_ref, w1_ref, w2_ref, bias_ref, out_ref):
    # ids_ref : VMEM (TILE_B, CONTEXT_SIZE) int32  -- token ids for this tile
    # emb_ref : VMEM (V_PAD, EMBED_DIM)            -- rows >= VOCAB_SIZE are 0
    # w1_ref  : VMEM (CONTEXT_SIZE*EMBED_DIM, HIDDEN_DIM)  (= torch W1.T)
    # w2_ref  : VMEM (HIDDEN_DIM, V_PAD)           -- padded cols are 0
    # bias_ref: VMEM (2, 128): row 0 = b1, row 1 = b2 padded with -1e30
    # out_ref : VMEM (TILE_B, V_PAD) f32 log-probs (padded lanes ~ -1e30)
    ids = ids_ref[...]                                           # (B, C) int32
    emb = emb_ref[...]                                           # (V_PAD, E)
    lane = jax.lax.broadcasted_iota(jnp.int32, (TILE_B, V_PAD), 1)

    # Embedding gather for every context position as a one-hot MXU matmul,
    # then fuse the flatten: concat the gathered rows along lanes and do a
    # single FC1 dot of shape (TILE_B, C*E) @ (C*E, HIDDEN).
    parts = []
    for i in range(CONTEXT_SIZE):
        onehot = (lane == ids[:, i:i + 1]).astype(jnp.float32)   # (B, V_PAD)
        parts.append(jnp.dot(onehot, emb,
                             preferred_element_type=jnp.float32))  # (B, E)
    embeds = jnp.concatenate(parts, axis=1)                      # (B, C*E)

    b1 = bias_ref[0:1, :HIDDEN_DIM]                              # (1, HIDDEN)
    b2 = bias_ref[1:2, :]                                        # (1, V_PAD)

    h = jnp.maximum(
        jnp.dot(embeds, w1_ref[...], preferred_element_type=jnp.float32) + b1,
        0.0)                                                     # ReLU, (B, H)

    logits = jnp.dot(h, w2_ref[...],
                     preferred_element_type=jnp.float32) + b2    # (B, V_PAD)

    # log_softmax along the lane axis; padded lanes hold -1e30 so exp -> 0.
    m = jnp.max(logits, axis=1, keepdims=True)
    shifted = logits - m
    lse = jnp.log(jnp.sum(jnp.exp(shifted), axis=1, keepdims=True))
    out_ref[...] = shifted - lse


def ngram_forward(ids, emb, w1, b1, w2, b2):
    """Batched forward.

    ids: (B, CONTEXT_SIZE) int32 token ids, or (CONTEXT_SIZE,) for a single
         context (then the result is (1, VOCAB_SIZE), matching the module).
    Returns (B, VOCAB_SIZE) float32 log-probs.
    """
    ids = jnp.asarray(ids, jnp.int32)
    if ids.ndim == 1:
        ids = ids[None, :]
    B = ids.shape[0]
    nb = pl.cdiv(B, TILE_B)
    B_pad = nb * TILE_B

    # Clamp ids: VMEM refs have no runtime bounds check, and out-of-range ids
    # would otherwise silently select padded (zero) embedding rows.
    ids = jnp.clip(ids, 0, VOCAB_SIZE - 1)
    ids_p = jnp.zeros((B_pad, CONTEXT_SIZE), jnp.int32).at[:B].set(ids)

    # Lane-pad vocab-sized tensors to 128; pack both biases into one buffer.
    emb_p = jnp.zeros((V_PAD, EMBED_DIM), jnp.float32).at[:VOCAB_SIZE].set(emb)
    w2_p = jnp.zeros((HIDDEN_DIM, V_PAD), jnp.float32).at[:, :VOCAB_SIZE].set(w2)
    b2_p = jnp.full((V_PAD,), -1e30, jnp.float32).at[:VOCAB_SIZE].set(
        b2.reshape(-1))
    biases = jnp.stack([b1.reshape(-1), b2_p], axis=0)           # (2, 128)

    flops = 2 * B_pad * (CONTEXT_SIZE * V_PAD * EMBED_DIM
                         + CONTEXT_SIZE * EMBED_DIM * HIDDEN_DIM
                         + HIDDEN_DIM * V_PAD)
    bytes_accessed = 4 * (B_pad * CONTEXT_SIZE + V_PAD * EMBED_DIM
                          + CONTEXT_SIZE * EMBED_DIM * HIDDEN_DIM
                          + HIDDEN_DIM * V_PAD + 2 * 128 + B_pad * V_PAD)
    cost = pl.CostEstimate(flops=flops,
                           transcendentals=B_pad * V_PAD,
                           bytes_accessed=bytes_accessed)

    out = pl.pallas_call(
        ngram_kernel,
        out_shape=jax.ShapeDtypeStruct((B_pad, V_PAD), jnp.float32),
        grid=(nb,),
        in_specs=[
            pl.BlockSpec((TILE_B, CONTEXT_SIZE), lambda b: (b, 0)),
            pl.BlockSpec((V_PAD, EMBED_DIM), lambda b: (0, 0)),
            pl.BlockSpec((CONTEXT_SIZE * EMBED_DIM, HIDDEN_DIM),
                         lambda b: (0, 0)),
            pl.BlockSpec((HIDDEN_DIM, V_PAD), lambda b: (0, 0)),
            pl.BlockSpec((2, 128), lambda b: (0, 0)),
        ],
        out_specs=pl.BlockSpec((TILE_B, V_PAD), lambda b: (b, 0)),
        compiler_params=pltpu.CompilerParams(
            dimension_semantics=("parallel",)),
        cost_estimate=cost,
    )(ids_p, emb_p, w1, w2_p, biases)

    return out[:B, :VOCAB_SIZE]


def ngram_forward_ref(ids, emb, w1, b1, w2, b2):
    """Pure-JAX reference matching the PyTorch forward exactly (batched)."""
    ids = jnp.asarray(ids, jnp.int32)
    if ids.ndim == 1:
        ids = ids[None, :]
    embeds = emb[ids].reshape(ids.shape[0], -1)                  # (B, C*E)
    h = jax.nn.relu(embeds @ w1 + b1)                            # (B, HIDDEN)
    logits = h @ w2 + b2                                         # (B, V)
    return jax.nn.log_softmax(logits, axis=1)


if __name__ == "__main__":
    key = jax.random.PRNGKey(0)
    k_emb, k_w1, k_b1, k_w2, k_b2, k_in = jax.random.split(key, 6)

    # Deterministic synthetic parameters (shapes from the module __init__;
    # dense weights stored transposed vs torch: feature axis last).
    emb = jax.random.normal(k_emb, (VOCAB_SIZE, EMBED_DIM), jnp.float32) * 0.1
    w1 = jax.random.normal(
        k_w1, (CONTEXT_SIZE * EMBED_DIM, HIDDEN_DIM), jnp.float32) * 0.1
    b1 = jax.random.normal(k_b1, (1, HIDDEN_DIM), jnp.float32) * 0.1
    w2 = jax.random.normal(k_w2, (HIDDEN_DIM, VOCAB_SIZE), jnp.float32) * 0.1
    b2 = jax.random.normal(k_b2, (1, VOCAB_SIZE), jnp.float32) * 0.1

    # Batched contexts: 256 contexts of 2 token ids (2 grid steps of 128).
    BATCH = 256
    ids_batch = jax.random.randint(
        k_in, (BATCH, CONTEXT_SIZE), 0, VOCAB_SIZE, jnp.int32)

    out = jax.block_until_ready(ngram_forward(ids_batch, emb, w1, b1, w2, b2))
    ref = ngram_forward_ref(ids_batch, emb, w1, b1, w2, b2)
    assert out.shape == (BATCH, VOCAB_SIZE)
    assert jnp.allclose(out, ref, atol=1e-5, rtol=1e-5), "batched mismatch"

    # Single-context path: matches the PyTorch module's (1, vocab) output.
    ids_single = ids_batch[0]                                    # (CONTEXT,)
    out1 = jax.block_until_ready(
        ngram_forward(ids_single, emb, w1, b1, w2, b2))
    ref1 = ngram_forward_ref(ids_single, emb, w1, b1, w2, b2)
    assert out1.shape == (1, VOCAB_SIZE)
    assert jnp.allclose(out1, ref1, atol=1e-5, rtol=1e-5), "single mismatch"

    print("KERNEL_OK")
</pallas_src>

<mosaic_0001>
module attributes {stable_mosaic.version = 11 : i64} {
  func.func @ngram_kernel(%arg0: i32, %arg1: memref<128x2xi32, #tpu.memory_space<vmem>>, %arg2: memref<128x32xf32, #tpu.memory_space<vmem>>, %arg3: memref<64x128xf32, #tpu.memory_space<vmem>>, %arg4: memref<128x128xf32, #tpu.memory_space<vmem>>, %arg5: memref<2x128xf32, #tpu.memory_space<vmem>>, %arg6: memref<128x128xf32, #tpu.memory_space<vmem>>) attributes {dimension_semantics = [#tpu.dimension_semantics<parallel>], iteration_bounds = array<i64: 2>, scalar_prefetch = 0 : i64, scratch_operands = 0 : i64, tpu.core_type = #tpu.core_type<tc>, window_params = [{transform_indices = @transform_0, window_bounds = array<i64: 128, 2>}, {pipeline_mode = #tpu.pipeline_mode<synchronous>, transform_indices = @transform_1, window_bounds = array<i64: 128, 32>}, {pipeline_mode = #tpu.pipeline_mode<synchronous>, transform_indices = @transform_2, window_bounds = array<i64: 64, 128>}, {pipeline_mode = #tpu.pipeline_mode<synchronous>, transform_indices = @transform_3, window_bounds = array<i64: 128, 128>}, {pipeline_mode = #tpu.pipeline_mode<synchronous>, transform_indices = @transform_4, window_bounds = array<i64: 2, 128>}, {transform_indices = @transform_5, window_bounds = array<i64: 128, 128>}]} {
    %c0 = arith.constant 0 : index
    %c0_0 = arith.constant 0 : index
    %0 = vector.load %arg1[%c0, %c0_0] : memref<128x2xi32, #tpu.memory_space<vmem>>, vector<128x2xi32>
    %c0_1 = arith.constant 0 : index
    %c0_2 = arith.constant 0 : index
    %1 = vector.load %arg2[%c0_1, %c0_2] : memref<128x32xf32, #tpu.memory_space<vmem>>, vector<128x32xf32>
    %2 = tpu.iota {dimensions = array<i32: 1>} : vector<128x128xi32>
    %3 = vector.extract_strided_slice %0 {offsets = [0, 0], sizes = [128, 1], strides = [1, 1]} : vector<128x2xi32> to vector<128x1xi32>
    %4 = vector.broadcast %3 : vector<128x1xi32> to vector<128x128xi32>
    %5 = arith.cmpi eq, %2, %4 : vector<128x128xi32>
    %6 = arith.extui %5 : vector<128x128xi1> to vector<128x128xi32>
    %7 = arith.sitofp %6 : vector<128x128xi32> to vector<128x128xf32>
    %cst = arith.constant dense<0.000000e+00> : vector<128x32xf32>
    %8 = tpu.matmul %7, %1, %cst {dimension_numbers = #tpu.dot_dimension_numbers<[1], [0], [0], [1], [0, 0, 1, 1], [], []>} : vector<128x128xf32>, vector<128x32xf32>, vector<128x32xf32> -> vector<128x32xf32>
    %9 = vector.extract_strided_slice %0 {offsets = [0, 1], sizes = [128, 1], strides = [1, 1]} : vector<128x2xi32> to vector<128x1xi32>
    %10 = vector.broadcast %9 : vector<128x1xi32> to vector<128x128xi32>
    %11 = arith.cmpi eq, %2, %10 : vector<128x128xi32>
    %12 = arith.extui %11 : vector<128x128xi1> to vector<128x128xi32>
    %13 = arith.sitofp %12 : vector<128x128xi32> to vector<128x128xf32>
    %cst_3 = arith.constant dense<0.000000e+00> : vector<128x32xf32>
    %14 = tpu.matmul %13, %1, %cst_3 {dimension_numbers = #tpu.dot_dimension_numbers<[1], [0], [0], [1], [0, 0, 1, 1], [], []>} : vector<128x128xf32>, vector<128x32xf32>, vector<128x32xf32> -> vector<128x32xf32>
    %15 = tpu.concatenate %8, %14 in 1 : vector<128x32xf32>, vector<128x32xf32> -> vector<128x64xf32>
    %c0_4 = arith.constant 0 : index
    %c0_5 = arith.constant 0 : index
    %16 = vector.load %arg5[%c0_4, %c0_5] : memref<2x128xf32, #tpu.memory_space<vmem>>, vector<1x128xf32>
    %c1 = arith.constant 1 : index
    %c0_6 = arith.constant 0 : index
    %17 = vector.load %arg5[%c1, %c0_6] : memref<2x128xf32, #tpu.memory_space<vmem>>, vector<1x128xf32>
    %c0_7 = arith.constant 0 : index
    %c0_8 = arith.constant 0 : index
    %18 = vector.load %arg3[%c0_7, %c0_8] : memref<64x128xf32, #tpu.memory_space<vmem>>, vector<64x128xf32>
    %cst_9 = arith.constant dense<0.000000e+00> : vector<128x128xf32>
    %19 = tpu.matmul %15, %18, %cst_9 {dimension_numbers = #tpu.dot_dimension_numbers<[1], [0], [0], [1], [0, 0, 1, 1], [], []>} : vector<128x64xf32>, vector<64x128xf32>, vector<128x128xf32> -> vector<128x128xf32>
    %20 = vector.broadcast %16 : vector<1x128xf32> to vector<128x128xf32>
    %21 = arith.addf %19, %20 : vector<128x128xf32>
    %cst_10 = arith.constant 0.000000e+00 : f32
    %22 = vector.broadcast %cst_10 : f32 to vector<128x128xf32>
    %23 = arith.maximumf %21, %22 : vector<128x128xf32>
    %c0_11 = arith.constant 0 : index
    %c0_12 = arith.constant 0 : index
    %24 = vector.load %arg4[%c0_11, %c0_12] : memref<128x128xf32, #tpu.memory_space<vmem>>, vector<128x128xf32>
    %cst_13 = arith.constant dense<0.000000e+00> : vector<128x128xf32>
    %25 = tpu.matmul %23, %24, %cst_13 {dimension_numbers = #tpu.dot_dimension_numbers<[1], [0], [0], [1], [0, 0, 1, 1], [], []>} : vector<128x128xf32>, vector<128x128xf32>, vector<128x128xf32> -> vector<128x128xf32>
    %26 = vector.broadcast %17 : vector<1x128xf32> to vector<128x128xf32>
    %27 = arith.addf %25, %26 : vector<128x128xf32>
    %cst_14 = arith.constant dense<0xFF800000> : vector<128xf32>
    %28 = vector.multi_reduction <maximumf>, %27, %cst_14 [1] : vector<128x128xf32> to vector<128xf32>
    %29 = vector.shape_cast %28 : vector<128xf32> to vector<128x1xf32>
    %30 = vector.broadcast %29 : vector<128x1xf32> to vector<128x128xf32>
    %31 = arith.subf %27, %30 : vector<128x128xf32>
    %32 = math.exp %31 : vector<128x128xf32>
    %cst_15 = arith.constant dense<0.000000e+00> : vector<128xf32>
    %33 = vector.multi_reduction <add>, %32, %cst_15 [1] : vector<128x128xf32> to vector<128xf32>
    %34 = vector.shape_cast %33 : vector<128xf32> to vector<128x1xf32>
    %35 = math.log %34 : vector<128x1xf32>
    %36 = vector.broadcast %35 : vector<128x1xf32> to vector<128x128xf32>
    %37 = arith.subf %31, %36 : vector<128x128xf32>
    %c0_16 = arith.constant 0 : index
    %c0_17 = arith.constant 0 : index
    %38 = vector.load %arg6[%c0_16, %c0_17] : memref<128x128xf32, #tpu.memory_space<vmem>>, vector<128x128xf32>
    tpu.vector_store %arg6[%c0_16, %c0_17], %37 {strides = array<i32>} : memref<128x128xf32, #tpu.memory_space<vmem>>, vector<128x128xf32>,
    return
  }
  func.func @transform_0(%arg0: i32) -> (i32, i32) {
    %c0_i32 = arith.constant 0 : i32
    %c0_i32_0 = arith.constant 0 : i32
    return %arg0, %c0_i32 : i32, i32
  }
  func.func @transform_1(%arg0: i32) -> (i32, i32) {
    %c0_i32 = arith.constant 0 : i32
    %c0_i32_0 = arith.constant 0 : i32
    %c0_i32_1 = arith.constant 0 : i32
    return %c0_i32, %c0_i32_0 : i32, i32
  }
  func.func @transform_2(%arg0: i32) -> (i32, i32) {
    %c0_i32 = arith.constant 0 : i32
    %c0_i32_0 = arith.constant 0 : i32
    %c0_i32_1 = arith.constant 0 : i32
    return %c0_i32, %c0_i32_0 : i32, i32
  }
  func.func @transform_3(%arg0: i32) -> (i32, i32) {
    %c0_i32 = arith.constant 0 : i32
    %c0_i32_0 = arith.constant 0 : i32
    %c0_i32_1 = arith.constant 0 : i32
    return %c0_i32, %c0_i32_0 : i32, i32
  }
  func.func @transform_4(%arg0: i32) -> (i32, i32) {
    %c0_i32 = arith.constant 0 : i32
    %c0_i32_0 = arith.constant 0 : i32
    %c0_i32_1 = arith.constant 0 : i32
    return %c0_i32, %c0_i32_0 : i32, i32
  }
  func.func @transform_5(%arg0: i32) -> (i32, i32) {
    %c0_i32 = arith.constant 0 : i32
    %c0_i32_0 = arith.constant 0 : i32
    return %arg0, %c0_i32 : i32, i32
  }
}

</mosaic_0001>

<bundles_post_ra>
// kernel: tpu_custom_call.1
= control target key start
LH: loop header
LB: loop body
LE: loop exit
PB: predicated region body
PF: predicated region fallthrough
CT: control target
= control target key end

     0   :  { %10 = vsyncpa [#allocation3], 0  ;;  %s1959_s0 = inlined_call_operand.vmem [shape: s32[256,2], index: 0, kind: input, shape index: {}]   ;;  %s1960_s1 = inlined_call_operand.vmem [shape: f32[128,32], index: 1, kind: input, shape index: {}]   ;;  %s1961_s2 = inlined_call_operand.vmem [shape: f32[64,128], index: 2, kind: input, shape index: {}]   ;;  %s1962_s3 = inlined_call_operand.vmem [shape: f32[128,128], index: 3, kind: input, shape index: {}]   ;;  %s1963_s4 = inlined_call_operand.vmem [shape: f32[2,128], index: 4, kind: input, shape index: {}]   ;;  %s1964_s5 = inlined_call_operand.hbm [shape: f32[256,128], index: 5, kind: output, shape index: {}]  }
   0x1   :  { %12 = vsyncpa [#allocation3 + $0x1], 0  ;;  %s1465_s18 = smov 0   ;;  %s1467_s19 = smov 0  }
   0x2   :  { %s1469_s20 = smov 0   ;;  %s1471_s21 = smov 0  }
   0x3 LB: > { %s1486_s22 = sadd.s32 4294967295, %s1427_s21   ;;  %s1140_s23 = sadd.s32 4294967294, %s1427_s21   ;;  %s1427_s21 = sphi %s1471_s21, %s1970_s21   ;;  %s1423_s20 = sphi %s1469_s20, %s1969_s20   ;;  %s1419_s19 = sphi %s1467_s19, %s1968_s19   ;;  %s1415_s18 = sphi %s1465_s18, %s1967_s18  }
   0x4   : > { %s1490_s24 = sadd.s32 1, %s1427_s21   ;;  %s135_s25 = sadd.s32 1, %s1423_s20 }
   0x5   : > { %s132_s26 = ssub.s32 %s1427_s21, %s1490_s24  ;;  %p145_p0 = scmp.ne.s32.totalorder %s1423_s20, %s1419_s19 }
   0x6   : > { %p133_p1 = scmp.eq.s32.totalorder %s132_s26, 0  ;;  %p146_p2 = scmp.eq.s32.totalorder %s1486_s22, 1 }
   0x7   : > { %p151_p3 = scmp.ne.s32.totalorder %s1419_s19, %s1415_s18  ;;  %p152_p4 = scmp.eq.s32.totalorder %s1140_s23, 1 }
   0x8   : > { %s1501_s27 = scalar_select %p133_p1, %s1423_s20, %s135_s25  }
   0x9   : > { %p1503_p5 = por %p146_p2, %p145_p0  ;;  %p1507_p6 = por %p152_p4, %p151_p3 }
   0xa   : > { %p1143_p7 = scmp.ge.s32.totalorder %s1427_s21, 1  ;;  %p191_p8 = scmp.lt.s32.totalorder %s1427_s21, 3 }
   0xc   : > { %p192_p9 = pnand %p1143_p7, %p191_p8 }
   0xd   : > { %s1145_s30 = sshll.u32 (!%p192_p9), %s1486_s22, 4  ;;  %s216_s16 = sand.u32 (!%p192_p9), 1, %s1419_s19  }
   0xe   : > { %195 = sbr.rel (%p192_p9) target bundleno = 1029 (0x405), region = 40  ;;  %p220_p10 = scmp.lt.s32.totalorder (!%p192_p9), %s1145_s30, 31 }
   0xf   : > { %s1144_s17 = sshll.u32 (!%p192_p9), %s216_s16, 7  ;;  %s1232_s25 = sshll.u32 (!%p192_p9), %s1486_s22, 7 }
  0x10   : > { %s1892_s23 = scalar_lea.vmem (!%p192_p9), [#allocation2], %s1144_s17  ;;  %s1063_s22 = scalar_lea.sflag (!%p192_p9), [#allocation3], %s216_s16 }
  0x11   : > { %s1075_s7 = sshll.u32 (!%p192_p9), %s1892_s23, 4  ;;  %s1385_s13 = scalar_lea.hbm (!%p192_p9), %s1964_s5, 256  ;;  %s1076_s7 = int_to_ptr.vmem [resolvable:$true] %s1075_s7 }
  0x13   : > { %v1429_v0 = vmov 1   ;;  %s1972_s30 = smov (!%p220_p10, %s1145_s30), 31  ;;  %v1430_v6 = vmov 0   ;;  %v257_v9 = vld [vmem:[%s1960_s1 + $0x78] sm:$0xff]  ;;  %v256_v10 = vld [vmem:[%s1960_s1 + $0x70] sm:$0xff]  ;;  %v255_v12 = vld [vmem:[%s1960_s1 + $0x68] sm:$0xff]  ;;  %v258_v34 = vlaneseq }
  0x14   : > { %1278 = vset.pattern.permute.xlu0 %v1429_v0  ;;  %1279 = vset.pattern.permute.xlu1 %v1429_v0  ;;  %s1146_s6 = sshll.u32 %s1972_s30, 3  ;;  %v254_v13 = vld [vmem:[%s1960_s1 + $0x60] sm:$0xff]  ;;  %v253_v14 = vld [vmem:[%s1960_s1 + $0x58] sm:$0xff]  ;;  %v252_v17 = vld [vmem:[%s1960_s1 + $0x50] sm:$0xff]  ;;  %v1431_v38 = vmov 1.0  }
  0x15   : > { %1280 = vset.pattern.permute.xlu2 %v1429_v0  ;;  %s1520_s9 = scalar_lea.vmem %s1959_s0, %s1146_s6  ;;  %517 = vmatpush.msra.mxu1 %v257_v9  ;;  %v251_v18 = vld [vmem:[%s1960_s1 + $0x48] sm:$0xff]  ;;  %v250_v19 = vld [vmem:[%s1960_s1 + $0x40] sm:$0xff]  ;;  %v249_v20 = vld [vmem:[%s1960_s1 + $0x38] sm:$0xff]  ;;  %v1606_v35 = vand.u32 127, %v258_v34  ;;  %s1074_s6 = scalar_lea.hbm %s1964_s5, %s1232_s25 }
  0x16   : > { %v226_v1 = vld [vmem:[%s1520_s9] sm:$0xff]  ;;  %v228_v2 = vld [vmem:[%s1520_s9 + $0x10] sm:$0xff]  ;;  %v227_v4 = vld [vmem:[%s1520_s9 + $0x8] sm:$0xff]  ;;  %356 = vmatpush.msra.mxu0 %v257_v9  ;;  %s1077_s8 = sshll.u32 %s1074_s6, 4  ;;  %s1078_s8 = int_to_ptr.hbm [resolvable:$true] %s1077_s8 }
  0x17   : > { %422 = vperm.xlu0 %1278, %v226_v1   ;;  %428 = vperm.xlu1 %1279, %v228_v2   ;;  %v230_v3 = vld [vmem:[%s1520_s9 + $0x20] sm:$0xff]  ;;  %v229_v5 = vld [vmem:[%s1520_s9 + $0x18] sm:$0xff]  ;;  %v231_v7 = vld [vmem:[%s1520_s9 + $0x28] sm:$0xff]  ;;  %s1379_s10 = sshra.s32 %s1078_s8, 4  ;;  %s1380_s10 = int_to_ptr.hbm [resolvable:$true] %s1379_s10 }
  0x18   : > { %434 = vperm.xlu2 %1280, %v230_v3   ;;  %v1531_v8 = vld [vmem:[%s1520_s9 + $0x30] sm:$0xff]  ;;  %518 = vmatpush.msra.mxu1 %v256_v10  ;;  %v233_v11 = vld [vmem:[%s1520_s9 + $0x38] sm:$0xff]  ;;  %v234_v15 = vld [vmem:[%s1520_s9 + $0x40] sm:$0xff]  ;;  %s1381_s11 = scalar_lea.hbm %s1380_s10, 128  ;;  %p1386_p0 = scmp.lt.s32.totalorder %s1380_s10, %s1964_s5 }
  0x19   : > { %357 = vmatpush.msra.mxu0 %v256_v10  ;;  %v235_v16 = vld [vmem:[%s1520_s9 + $0x48] sm:$0xff]  ;;  %v248_v21 = vld [vmem:[%s1960_s1 + $0x30] sm:$0xff]  ;;  %v246_v24 = vld [vmem:[%s1960_s1 + $0x20] sm:$0xff]  ;;  %p1382_p11 = scmp.ne.s32.totalorder %s1380_s10, %s1381_s11  ;;  %p1387_p1 = scmp.lt.s32.totalorder %s1385_s13, %s1381_s11 }
  0x1a   : > { %519 = vmatpush.msra.mxu1 %v255_v12  ;;  %v236_v22 = vld [vmem:[%s1520_s9 + $0x50] sm:$0xff]  ;;  %v247_v23 = vld [vmem:[%s1960_s1 + $0x28] sm:$0xff]  ;;  %v245_v25 = vld [vmem:[%s1960_s1 + $0x18] sm:$0xff] }
  0x1b   : > { %358 = vmatpush.msra.mxu0 %v255_v12  ;;  %v244_v26 = vld [vmem:[%s1960_s1 + $0x10] sm:$0xff]  ;;  %v237_v28 = vld [vmem:[%s1520_s9 + $0x58] sm:$0xff]  ;;  %v243_v29 = vld [vmem:[%s1960_s1 + $0x8] sm:$0xff]  ;;  %p1383_p12 = pnand %p1382_p11, %p1503_p5  ;;  %p1388_p2 = por %p1387_p1, %p1386_p0 }
  0x1c   : > { %520 = vmatpush.msra.mxu1 %v254_v13  ;;  %v240_v27 = vld [vmem:[%s1520_s9 + $0x70] sm:$0xff]  ;;  %v238_v30 = vld [vmem:[%s1520_s9 + $0x60] sm:$0xff]  ;;  %v239_v31 = vld [vmem:[%s1520_s9 + $0x68] sm:$0xff] }
  0x1d   : > { %359 = vmatpush.msra.mxu0 %v254_v13  ;;  %v242_v32 = vld [vmem:[%s1960_s1] sm:$0xff]  ;;  %v241_v36 = vld [vmem:[%s1520_s9 + $0x78] sm:$0xff]  ;;  %s1432_s9 = smov 32   ;;  %p1384_p13 = pneg %p1383_p12 }
  0x1e   : > { %521 = vmatpush.msra.mxu1 %v253_v14 }
  0x1f   : > { %425 = vperm.xlu0 %1278, %v227_v4   ;;  %431 = vperm.xlu1 %1279, %v229_v5   ;;  %p1389_p3 = pnand %p1388_p2, %p1384_p13 }
  0x20   : > { %1281 = vset.pattern.permute.xlu2 %v1430_v6  ;;  %522 = vmatpush.msra.mxu1 %v252_v17 }
  0x21   : > { %261 = vperm.xlu2 %1281, %v226_v1   ;;  %360 = vmatpush.msra.mxu0 %v253_v14  ;;  %v672_v14 = vld [vmem:[%s1961_s2 + $0x38] sm:$0xff] }
  0x22   : > { %523 = vmatpush.msra.mxu1 %v251_v18  ;;  %731 = vmatpush.msra.mxu2 %v672_v14 }
  0x23   : > { %361 = vmatpush.msra.mxu0 %v252_v17  ;;  %v670_v17 = vld [vmem:[%s1961_s2 + $0x28] sm:$0xff] }
  0x24   : > { %524 = vmatpush.msra.mxu1 %v250_v19 }
  0x25   : > { %362 = vmatpush.msra.mxu0 %v251_v18  ;;  %v669_v18 = vld [vmem:[%s1961_s2 + $0x20] sm:$0xff] }
  0x26   : > { %525 = vmatpush.msra.mxu1 %v249_v20 }
  0x27   : > { %437 = vperm.xlu0 %1278, %v231_v7   ;;  %1282 = vset.pattern.permute.xlu1 %v1430_v6 }
  0x28   : > { %264 = vperm.xlu1 %1282, %v227_v4   ;;  %363 = vmatpush.msra.mxu0 %v250_v19  ;;  %v668_v19 = vld [vmem:[%s1961_s2 + $0x18] sm:$0xff] }
  0x29   : > { %1283 = vset.pattern.permute.xlu2 %v1429_v0  ;;  %526 = vmatpush.msra.mxu1 %v248_v21 }
  0x2a   : > { %440 = vperm.xlu2 %1283, %v1531_v8   ;;  %364 = vmatpush.msra.mxu0 %v249_v20  ;;  %v667_v20 = vld [vmem:[%s1961_s2 + $0x10] sm:$0xff] }
  0x2b   : > { %527 = vmatpush.msra.mxu1 %v247_v23 }
  0x2c   : > { %365 = vmatpush.msra.mxu0 %v248_v21 }
  0x2d   : > { %528 = vmatpush.msra.mxu1 %v246_v24 }
  0x2e   : > { %366 = vmatpush.msra.mxu0 %v247_v23  ;;  %v665_v23 = vld [vmem:[%s1961_s2] sm:$0xff] }
  0x2f   : > { %1284 = vset.pattern.permute.xlu0 %v1430_v6  ;;  %529 = vmatpush.msra.mxu1 %v245_v25 }
  0x30   : > { %1285 = vset.pattern.permute.xlu1 %v1429_v0  ;;  %267 = vperm.xlu0 %1284, %v228_v2  }
  0x31   : > { %443 = vperm.xlu1 %1285, %v233_v11   ;;  %530 = vmatpush.msra.mxu1 %v244_v26 }
  0x32   : > { %1286 = vset.pattern.permute.xlu2 %v1430_v6  ;;  %367 = vmatpush.msra.mxu0 %v246_v24 }
  0x33   : > { %270 = vperm.xlu2 %1286, %v229_v5   ;;  %531 = vmatpush.msra.mxu1 %v243_v29 }
  0x34   : > { %368 = vmatpush.msra.mxu0 %v245_v25 }
  0x35   : > { %532 = vmatpush.msra.mxu1 %v242_v32 }
  0x36   : > { %369 = vmatpush.msra.mxu0 %v244_v26 }
  0x38   : > { %1287 = vset.pattern.permute.xlu0 %v1429_v0  ;;  %370 = vmatpush.msra.mxu0 %v243_v29 }
  0x39   : > { %446 = vperm.xlu1 %1285, %v234_v15   ;;  %449 = vperm.xlu0 %1287, %v235_v16  }
  0x3a   : > { %371 = vmatpush.msra.mxu0 %v242_v32 }
  0x3b   : > { %273 = vperm.xlu2 %1286, %v230_v3  }
  0x41   : > { %1288 = vset.pattern.permute.xlu1 %v1430_v6  ;;  %1290 = vset.pattern.permute.xlu0 %v1430_v6 }
  0x42   : > { %276 = vperm.xlu1 %1288, %v231_v7   ;;  %282 = vperm.xlu0 %1290, %v233_v11  }
  0x43   : > { %1289 = vset.pattern.permute.xlu2 %v1429_v0 }
  0x44   : > { %452 = vperm.xlu2 %1289, %v236_v22  }
  0x4a   : > { %279 = vperm.xlu1 %1288, %v1531_v8   ;;  %1293 = vset.pattern.permute.xlu0 %v1429_v0 }
  0x4b   : > { %464 = vperm.xlu0 %1293, %v240_v27  }
  0x4c   : > { %455 = vperm.xlu2 %1289, %v237_v28  }
  0x52   : > { %1291 = vset.pattern.permute.xlu1 %v1429_v0 }
  0x53   : > { %458 = vperm.xlu1 %1291, %v238_v30   ;;  %1297 = vset.pattern.permute.xlu0 %v1430_v6 }
  0x54   : > { %1292 = vset.pattern.permute.xlu2 %v1430_v6  ;;  %300 = vperm.xlu0 %1297, %v239_v31  }
  0x55   : > { %285 = vperm.xlu2 %1292, %v234_v15   ;;  %v671_v15 = vld [vmem:[%s1961_s2 + $0x30] sm:$0xff] }
  0x56   : > { %732 = vmatpush.msra.mxu2 %v671_v15  ;;  %v807_v15 = vld [vmem:[%s1962_s3 + $0x18] sm:$0xff] }
  0x58   : > { %733 = vmatpush.msra.mxu2 %v670_v17  ;;  %v806_v17 = vld [vmem:[%s1962_s3 + $0x10] sm:$0xff] }
  0x5a   : > { %734 = vmatpush.msra.mxu2 %v669_v18 }
  0x5b   : > { %461 = vperm.xlu1 %1291, %v239_v31  }
  0x5c   : > { %1298 = vset.pattern.permute.xlu0 %v1429_v0  ;;  %735 = vmatpush.msra.mxu2 %v668_v19 }
  0x5d   : > { %288 = vperm.xlu2 %1292, %v235_v16  }
  0x5e   : > { %736 = vmatpush.msra.mxu2 %v667_v20  ;;  %v805_v20 = vld [vmem:[%s1962_s3 + $0x8] sm:$0xff] }
  0x63   : > { %1294 = vset.pattern.permute.xlu1 %v1430_v6 }
  0x64   : > { %291 = vperm.xlu1 %1294, %v236_v22   ;;  %v666_v22 = vld [vmem:[%s1961_s2 + $0x8] sm:$0xff] }
  0x65   : > { %1295 = vset.pattern.permute.xlu2 %v1429_v0  ;;  %737 = vmatpush.msra.mxu2 %v666_v22 }
  0x66   : > { %467 = vperm.xlu2 %1295, %v241_v36  }
  0x67   : > { %738 = vmatpush.msra.mxu2 %v665_v23 }
  0x6c   : > { %294 = vperm.xlu1 %1294, %v237_v28  }
  0x6e   : > { %1296 = vset.pattern.permute.xlu2 %v1430_v6 }
  0x6f   : > { %297 = vperm.xlu2 %1296, %v238_v30  }
  0x72   : > { %v435_v33 = vpop.permute.xlu2 %434 }
  0x73   : > { %vm473_vm8 = vcmp.eq.s32.totalorder %v1606_v35, %v435_v33 }
  0x74   : > { %303 = vperm.xlu1 %1294, %v240_v27  }
  0x77   : > { %306 = vperm.xlu2 %1296, %v241_v36  }
  0x7b   : > { %v262_v37 = vpop.permute.xlu2 %261 }
  0x7c   : > { %vm308_vm0 = vcmp.eq.s32.totalorder %v1606_v35, %v262_v37 }
  0x7d   : > { %1163 = vmatmul.msk.f32.vlgmr.msra.gmra.mxu0 %vm308_vm0, %v1431_v38 }
  0x84   : > { %v441_v43 = vpop.permute.xlu2 %440 }
  0x85   : > { %vm475_vm11 = vcmp.eq.s32.totalorder %v1606_v35, %v441_v43 }
  0x89   : > { %v423_v39 = vpop.permute.xlu0 %422  ;;  %v429_v40 = vpop.permute.xlu1 %428 }
  0x8a   : > { %vm469_vm1 = vcmp.eq.s32.totalorder %v1606_v35, %v423_v39  ;;  %vm471_vm3 = vcmp.eq.s32.totalorder %v1606_v35, %v429_v40 }
  0x8b   : > { %1195 = vmatmul.msk.f32.vlgmr.msra.gmra.mxu1 %vm469_vm1, %v1431_v38 }
  0x8d   : > { %v271_v48 = vpop.permute.xlu2 %270 }
  0x8e   : > { %vm311_vm7 = vcmp.eq.s32.totalorder %v1606_v35, %v271_v48 }
  0x91   : > { %v426_v41 = vpop.permute.xlu0 %425  ;;  %v432_v42 = vpop.permute.xlu1 %431 }
  0x92   : > { %vm470_vm2 = vcmp.eq.s32.totalorder %v1606_v35, %v426_v41  ;;  %vm472_vm5 = vcmp.eq.s32.totalorder %v1606_v35, %v432_v42 }
  0x93   : > { %1196 = vmatmul.msk.f32.gmra.mxu1 %vm470_vm2, %v1431_v38 }
  0x95   : > { %v274_v50 = vpop.permute.xlu2 %273 }
  0x96   : > { %vm312_vm9 = vcmp.eq.s32.totalorder %v1606_v35, %v274_v50 }
  0x99   : > { %v438_v44 = vpop.permute.xlu0 %437 }
  0x9a   : > { %v265_v45 = vpop.permute.xlu1 %264  ;;  %vm474_vm10 = vcmp.eq.s32.totalorder %v1606_v35, %v438_v44 }
  0x9b   : > { %1197 = vmatmul.msk.f32.gmra.mxu1 %vm471_vm3, %v1431_v38  ;;  %vm309_vm4 = vcmp.eq.s32.totalorder %v1606_v35, %v265_v45 }
  0x9c   : > { %1164 = vmatmul.msk.f32.gmra.mxu0 %vm309_vm4, %v1431_v38 }
  0x9e   : > { %v453_v52 = vpop.permute.xlu2 %452 }
  0x9f   : > { %vm479_vm3 = vcmp.eq.s32.totalorder %v1606_v35, %v453_v52 }
  0xa2   : > { %v268_v46 = vpop.permute.xlu0 %267 }
  0xa3   : > { %1198 = vmatmul.msk.f32.gmra.mxu1 %vm472_vm5, %v1431_v38  ;;  %vm310_vm6 = vcmp.eq.s32.totalorder %v1606_v35, %v268_v46  ;;  %v444_v47 = vpop.permute.xlu1 %443 }
  0xa4   : > { %1165 = vmatmul.msk.f32.gmra.mxu0 %vm310_vm6, %v1431_v38  ;;  %vm476_vm13 = vcmp.eq.s32.totalorder %v1606_v35, %v444_v47 }
  0xa6   : > { %v456_v55 = vpop.permute.xlu2 %455 }
  0xa7   : > { %vm480_vm5 = vcmp.eq.s32.totalorder %v1606_v35, %v456_v55 }
  0xab   : > { %1199 = vmatmul.msk.f32.gmra.mxu1 %vm473_vm8, %v1431_v38  ;;  %v447_v49 = vpop.permute.xlu1 %446  ;;  %v450_v53 = vpop.permute.xlu0 %449 }
  0xac   : > { %1166 = vmatmul.msk.f32.gmra.mxu0 %vm311_vm7, %v1431_v38  ;;  %vm477_vm0 = vcmp.eq.s32.totalorder %v1606_v35, %v447_v49  ;;  %vm478_vm1 = vcmp.eq.s32.totalorder %v1606_v35, %v450_v53 }
  0xaf   : > { %v286_v57 = vpop.permute.xlu2 %285 }
  0xb0   : > { %vm316_vm2 = vcmp.eq.s32.totalorder %v1606_v35, %v286_v57 }
  0xb3   : > { %1200 = vmatmul.msk.f32.gmra.mxu1 %vm474_vm10, %v1431_v38 }
  0xb4   : > { %1167 = vmatmul.msk.f32.gmra.mxu0 %vm312_vm9, %v1431_v38  ;;  %v277_v51 = vpop.permute.xlu1 %276  ;;  %v283_v56 = vpop.permute.xlu0 %282 }
  0xb5   : > { %vm313_vm12 = vcmp.eq.s32.totalorder %v1606_v35, %v277_v51  ;;  %vm315_vm15 = vcmp.eq.s32.totalorder %v1606_v35, %v283_v56 }
  0xb7   : > { %v289_v58 = vpop.permute.xlu2 %288 }
  0xb8   : > { %vm317_vm4 = vcmp.eq.s32.totalorder %v1606_v35, %v289_v58 }
  0xbb   : > { %1201 = vmatmul.msk.f32.gmra.mxu1 %vm475_vm11, %v1431_v38 }
  0xbc   : > { %1168 = vmatmul.msk.f32.gmra.mxu0 %vm313_vm12, %v1431_v38  ;;  %v280_v54 = vpop.permute.xlu1 %279 }
  0xbd   : > { %vm314_vm14 = vcmp.eq.s32.totalorder %v1606_v35, %v280_v54  ;;  %v465_v61 = vpop.permute.xlu0 %464 }
  0xbe   : > { %vm483_vm8 = vcmp.eq.s32.totalorder %v1606_v35, %v465_v61  ;;  %v818_v61 = vld [vmem:[%s1962_s3 + $0x70] sm:$0xff] }
  0xc0   : > { %v468_v62 = vpop.permute.xlu2 %467 }
  0xc1   : > { %vm484_vm9 = vcmp.eq.s32.totalorder %v1606_v35, %v468_v62  ;;  %v817_v62 = vld [vmem:[%s1962_s3 + $0x68] sm:$0xff] }
  0xc3   : > { %1202 = vmatmul.msk.f32.gmra.mxu1 %vm476_vm13, %v1431_v38 }
  0xc4   : > { %1169 = vmatmul.msk.f32.gmra.mxu0 %vm314_vm14, %v1431_v38 }
  0xc5   : > { %v459_v59 = vpop.permute.xlu1 %458 }
  0xc6   : > { %vm481_vm6 = vcmp.eq.s32.totalorder %v1606_v35, %v459_v59  ;;  %v301_v6 = vpop.permute.xlu0 %300 }
  0xc7   : > { %vm321_vm13 = vcmp.eq.s32.totalorder %v1606_v35, %v301_v6 }
  0xc9   : > { %v298_v4 = vpop.permute.xlu2 %297 }
  0xca   : > { %vm320_vm12 = vcmp.eq.s32.totalorder %v1606_v35, %v298_v4  ;;  %v814_v4 = vld [vmem:[%s1962_s3 + $0x50] sm:$0xff] }
  0xcb   : > { %1203 = vmatmul.msk.f32.gmra.mxu1 %vm477_vm0, %v1431_v38  ;;  %vm674_vm0 = vcmask 523264  }
  0xcc   : > { %1170 = vmatmul.msk.f32.gmra.mxu0 %vm315_vm15, %v1431_v38 }
  0xcd   : > { %v462_v60 = vpop.permute.xlu1 %461 }
  0xce   : > { %vm482_vm7 = vcmp.eq.s32.totalorder %v1606_v35, %v462_v60  ;;  %v819_v60 = vld [vmem:[%s1962_s3 + $0x78] sm:$0xff] }
  0xcf   : > { %821 = vmatpush.msra.mxu3 %v819_v60 }
  0xd1   : > { %v307_v11 = vpop.permute.xlu2 %306  ;;  %822 = vmatpush.msra.mxu3 %v818_v61 }
  0xd2   : > { %vm323_vm15 = vcmp.eq.s32.totalorder %v1606_v35, %v307_v11 }
  0xd3   : > { %1204 = vmatmul.msk.f32.gmra.mxu1 %vm478_vm1, %v1431_v38  ;;  %vm646_vm1 = vcmask 261120   ;;  %823 = vmatpush.msra.mxu3 %v817_v62 }
  0xd4   : > { %1171 = vmatmul.msk.f32.gmra.mxu0 %vm316_vm2, %v1431_v38 }
  0xd6   : > { %v292_v0 = vpop.permute.xlu1 %291 }
  0xd7   : > { %vm318_vm10 = vcmp.eq.s32.totalorder %v1606_v35, %v292_v0  ;;  %v816_v0 = vld [vmem:[%s1962_s3 + $0x60] sm:$0xff] }
  0xd8   : > { %824 = vmatpush.msra.mxu3 %v816_v0 }
  0xdb   : > { %1205 = vmatmul.msk.f32.gmra.mxu1 %vm479_vm3, %v1431_v38 }
  0xdc   : > { %1172 = vmatmul.msk.f32.gmra.mxu0 %vm317_vm4, %v1431_v38 }
  0xde   : > { %v295_v2 = vpop.permute.xlu1 %294 }
  0xdf   : > { %vm319_vm11 = vcmp.eq.s32.totalorder %v1606_v35, %v295_v2 }
  0xe3   : > { %1206 = vmatmul.msk.f32.gmra.mxu1 %vm480_vm5, %v1431_v38 }
  0xe4   : > { %1173 = vmatmul.msk.f32.gmra.mxu0 %vm318_vm10, %v1431_v38 }
  0xe6   : > { %v304_v8 = vpop.permute.xlu1 %303 }
  0xe7   : > { %vm322_vm14 = vcmp.eq.s32.totalorder %v1606_v35, %v304_v8 }
  0xeb   : > { %1207 = vmatmul.msk.f32.gmra.mxu1 %vm481_vm6, %v1431_v38 }
  0xec   : > { %1174 = vmatmul.msk.f32.gmra.mxu0 %vm319_vm11, %v1431_v38 }
  0xf3   : > { %1208 = vmatmul.msk.f32.gmra.mxu1 %vm482_vm7, %v1431_v38 }
  0xf4   : > { %1175 = vmatmul.msk.f32.gmra.mxu0 %vm320_vm12, %v1431_v38 }
  0xfa   : > { %v373_v25 = vpop.f32.mrf.mxu0 }
  0xfb   : > { %1209 = vmatmul.msk.f32.gmra.mxu1 %vm483_vm8, %v1431_v38 }
  0xfc   : > { %1176 = vmatmul.msk.f32.gmra.mxu0 %vm321_vm13, %v1431_v38 }
 0x103   : > { %1210 = vmatmul.msk.f32.gmra.mxu1 %vm484_vm9, %v1431_v38 }
 0x104   : > { %1177 = vmatmul.msk.f32.gmra.mxu0 %vm322_vm14, %v1431_v38 }
 0x108   : > { %v534_v63 = vpop.f32.mrf.mxu1 }
 0x109   : > { %598 = vrot.lane.b32.xlu1 %v534_v63, %s1432_s9 }
 0x10c   : > { %1178 = vmatmul.msk.f32.gmra.mxu0 %vm323_vm15, %v1431_v38 }
 0x110   : > { %v537_v1 = vpop.f32.mrf.mxu1 }
 0x111   : > { %600 = vrot.lane.b32.xlu2 %v537_v1, %s1432_s9 }
 0x118   : > { %v540_v3 = vpop.f32.mrf.mxu1 }
 0x119   : > { %602 = vrot.lane.b32.xlu0 %v540_v3, %s1432_s9  ;;  %v376_v27 = vpop.f32.mrf.mxu0  ;;  %v815_v3 = vld [vmem:[%s1962_s3 + $0x58] sm:$0xff] }
 0x11a   : > { %825 = vmatpush.msra.mxu3 %v815_v3 }
 0x11c   : > { %826 = vmatpush.msra.mxu3 %v814_v4 }
 0x120   : > { %v543_v5 = vpop.f32.mrf.mxu1 }
 0x121   : > { %604 = vrot.lane.b32.xlu1 %v543_v5, %s1432_s9  ;;  %v379_v29 = vpop.f32.mrf.mxu0  ;;  %v813_v5 = vld [vmem:[%s1962_s3 + $0x48] sm:$0xff] }
 0x122   : > { %827 = vmatpush.msra.mxu3 %v813_v5 }
 0x128   : > { %v546_v7 = vpop.f32.mrf.mxu1 }
 0x129   : > { %606 = vrot.lane.b32.xlu2 %v546_v7, %s1432_s9  ;;  %v382_v33 = vpop.f32.mrf.mxu0  ;;  %v812_v7 = vld [vmem:[%s1962_s3 + $0x40] sm:$0xff] }
 0x12a   : > { %828 = vmatpush.msra.mxu3 %v812_v7 }
 0x130   : > { %v549_v9 = vpop.f32.mrf.mxu1 }
 0x131   : > { %608 = vrot.lane.b32.xlu0 %v549_v9, %s1432_s9  ;;  %v385_v37 = vpop.f32.mrf.mxu0  ;;  %v811_v9 = vld [vmem:[%s1962_s3 + $0x38] sm:$0xff] }
 0x132   : > { %829 = vmatpush.msra.mxu3 %v811_v9 }
 0x138   : > { %v552_v10 = vpop.f32.mrf.mxu1 }
 0x139   : > { %610 = vrot.lane.b32.xlu1 %v552_v10, %s1432_s9  ;;  %v388_v40 = vpop.f32.mrf.mxu0  ;;  %v810_v10 = vld [vmem:[%s1962_s3 + $0x30] sm:$0xff] }
 0x13a   : > { %830 = vmatpush.msra.mxu3 %v810_v10 }
 0x140   : > { %v555_v12 = vpop.f32.mrf.mxu1 }
 0x141   : > { %612 = vrot.lane.b32.xlu2 %v555_v12, %s1432_s9  ;;  %v391_v45 = vpop.f32.mrf.mxu0  ;;  %v809_v12 = vld [vmem:[%s1962_s3 + $0x28] sm:$0xff] }
 0x142   : > { %831 = vmatpush.msra.mxu3 %v809_v12 }
 0x148   : > { %v558_v13 = vpop.f32.mrf.mxu1 }
 0x149   : > { %614 = vrot.lane.b32.xlu0 %v558_v13, %s1432_s9  ;;  %v394_v48 = vpop.f32.mrf.mxu0  ;;  %v808_v13 = vld [vmem:[%s1962_s3 + $0x20] sm:$0xff] }
 0x14a   : > { %832 = vmatpush.msra.mxu3 %v808_v13 }
 0x14c   : > { %833 = vmatpush.msra.mxu3 %v807_v15 }
 0x14e   : > { %834 = vmatpush.msra.mxu3 %v806_v17 }
 0x150   : > { %v561_v16 = vpop.f32.mrf.mxu1  ;;  %835 = vmatpush.msra.mxu3 %v805_v20 }
 0x151   : > { %616 = vrot.lane.b32.xlu1 %v561_v16, %s1432_s9  ;;  %v397_v51 = vpop.f32.mrf.mxu0 }
 0x158   : > { %v564_v21 = vpop.f32.mrf.mxu1 }
 0x159   : > { %618 = vrot.lane.b32.xlu2 %v564_v21, %s1432_s9  ;;  %v400_v54 = vpop.f32.mrf.mxu0  ;;  %v804_v21 = vld [vmem:[%s1962_s3] sm:$0xff] }
 0x15a   : > { %836 = vmatpush.msra.mxu3 %v804_v21 }
 0x160   : > { %v567_v24 = vpop.f32.mrf.mxu1 }
 0x161   : > { %620 = vrot.lane.b32.xlu0 %v567_v24, %s1432_s9  ;;  %v403_v57 = vpop.f32.mrf.mxu0 }
 0x168   : > { %v570_v26 = vpop.f32.mrf.mxu1 }
 0x169   : > { %622 = vrot.lane.b32.xlu1 %v570_v26, %s1432_s9  ;;  %v406_v2 = vpop.f32.mrf.mxu0 }
 0x16b   : > { %v601_v35 = vpop.permute.xlu2 %600 }
 0x16c   : > { %v648_v36 = vsel %vm646_vm1, %v376_v27, %v601_v35 }
 0x170   : > { %v573_v28 = vpop.f32.mrf.mxu1 }
 0x171   : > { %624 = vrot.lane.b32.xlu2 %v573_v28, %s1432_s9  ;;  %v409_v11 = vpop.f32.mrf.mxu0 }
 0x178   : > { %v576_v30 = vpop.f32.mrf.mxu1 }
 0x179   : > { %626 = vrot.lane.b32.xlu0 %v576_v30, %s1432_s9  ;;  %v412_v18 = vpop.f32.mrf.mxu0 }
 0x17b   : > { %v599_v31 = vpop.permute.xlu1 %598 }
 0x17c   : > { %v647_v32 = vsel %vm646_vm1, %v373_v25, %v599_v31 }
 0x17d   : > { %1211 = vmatmul.msk.f32.vlgmr.msra.gmra.mxu2 %vm674_vm0, %v647_v32 }
 0x180   : > { %v579_v34 = vpop.f32.mrf.mxu1 }
 0x181   : > { %628 = vrot.lane.b32.xlu1 %v579_v34, %s1432_s9  ;;  %v415_v23 = vpop.f32.mrf.mxu0 }
 0x183   : > { %v607_v43 = vpop.permute.xlu2 %606 }
 0x184   : > { %v651_v44 = vsel %vm646_vm1, %v385_v37, %v607_v43 }
 0x185   : > { %1212 = vmatmul.msk.f32.gmra.mxu2 %vm674_vm0, %v648_v36 }
 0x189   : > { %v418_v26 = vpop.f32.mrf.mxu0 }
 0x18b   : > { %v603_v38 = vpop.permute.xlu0 %602 }
 0x18c   : > { %v649_v39 = vsel %vm646_vm1, %v379_v29, %v603_v38  ;;  %v1299_v29 = vld [vmem:[%s1963_s4] ss:$0 sm:$0xff] }
 0x18d   : > { %1213 = vmatmul.msk.f32.gmra.mxu2 %vm674_vm0, %v649_v39 }
 0x193   : > { %v605_v41 = vpop.permute.xlu1 %604 }
 0x194   : > { %v650_v42 = vsel %vm646_vm1, %v382_v33, %v605_v41 }
 0x195   : > { %1214 = vmatmul.msk.f32.gmra.mxu2 %vm674_vm0, %v650_v42 }
 0x19b   : > { %v613_v52 = vpop.permute.xlu2 %612 }
 0x19c   : > { %v654_v53 = vsel %vm646_vm1, %v394_v48, %v613_v52 }
 0x19d   : > { %1215 = vmatmul.msk.f32.gmra.mxu2 %vm674_vm0, %v651_v44 }
 0x1a3   : > { %v609_v46 = vpop.permute.xlu0 %608 }
 0x1a4   : > { %v652_v47 = vsel %vm646_vm1, %v388_v40, %v609_v46 }
 0x1a5   : > { %1216 = vmatmul.msk.f32.gmra.mxu2 %vm674_vm0, %v652_v47 }
 0x1ab   : > { %v611_v49 = vpop.permute.xlu1 %610 }
 0x1ac   : > { %v653_v50 = vsel %vm646_vm1, %v391_v45, %v611_v49 }
 0x1ad   : > { %1217 = vmatmul.msk.f32.gmra.mxu2 %vm674_vm0, %v653_v50 }
 0x1b3   : > { %v619_v63 = vpop.permute.xlu2 %618 }
 0x1b4   : > { %v657_v1 = vsel %vm646_vm1, %v403_v57, %v619_v63 }
 0x1b5   : > { %1218 = vmatmul.msk.f32.gmra.mxu2 %vm674_vm0, %v654_v53 }
 0x1bb   : > { %v615_v55 = vpop.permute.xlu0 %614 }
 0x1bc   : > { %v655_v56 = vsel %vm646_vm1, %v397_v51, %v615_v55 }
 0x1bd   : > { %1219 = vmatmul.msk.f32.gmra.mxu2 %vm674_vm0, %v655_v56 }
 0x1c3   : > { %v617_v58 = vpop.permute.xlu1 %616 }
 0x1c4   : > { %v656_v59 = vsel %vm646_vm1, %v400_v54, %v617_v58 }
 0x1c5   : > { %1220 = vmatmul.msk.f32.gmra.mxu2 %vm674_vm0, %v656_v59 }
 0x1cb   : > { %v625_v19 = vpop.permute.xlu2 %624 }
 0x1cc   : > { %v660_v22 = vsel %vm646_vm1, %v412_v18, %v625_v19 }
 0x1cd   : > { %1221 = vmatmul.msk.f32.gmra.mxu2 %vm674_vm0, %v657_v1 }
 0x1d3   : > { %v621_v6 = vpop.permute.xlu0 %620 }
 0x1d4   : > { %v658_v8 = vsel %vm646_vm1, %v406_v2, %v621_v6 }
 0x1d5   : > { %1222 = vmatmul.msk.f32.gmra.mxu2 %vm674_vm0, %v658_v8 }
 0x1db   : > { %v623_v14 = vpop.permute.xlu1 %622 }
 0x1dc   : > { %v659_v16 = vsel %vm646_vm1, %v409_v11, %v623_v14  ;;  %v1300_v14 = vld [vmem:[%s1963_s4 + $0x1] ss:$0 sm:$0xff] }
 0x1dd   : > { %1223 = vmatmul.msk.f32.gmra.mxu2 %vm674_vm0, %v659_v16 }
 0x1e5   : > { %1224 = vmatmul.msk.f32.gmra.mxu2 %vm674_vm0, %v660_v22 }
 0x1eb   : > { %v627_v24 = vpop.permute.xlu0 %626 }
 0x1ec   : > { %v661_v25 = vsel %vm646_vm1, %v415_v23, %v627_v24 }
 0x1ed   : > { %1225 = vmatmul.msk.f32.gmra.mxu2 %vm674_vm0, %v661_v25 }
 0x1f3   : > { %v629_v27 = vpop.permute.xlu1 %628 }
 0x1f4   : > { %v662_v28 = vsel %vm646_vm1, %v418_v26, %v629_v27 }
 0x1f5   : > { %1226 = vmatmul.msk.f32.gmra.mxu2 %vm674_vm0, %v662_v28 }
 0x200   : > { %v740_v30 = vpop.f32.mrf.mxu2 }
 0x201   : > { %v741_v31 = vadd.f32 %v1299_v29, %v740_v30 }
 0x203   : > { %v788_v32 = vmax.f32 %v741_v31, 0.0 }
 0x205   : > { %837 = vmatmul.f32.vlgmr.msra.gmra.mxu3 %v788_v32 }
 0x208   : > { %v743_v33 = vpop.f32.mrf.mxu2 }
 0x209   : > { %v744_v34 = vadd.f32 %v1299_v29, %v743_v33 }
 0x20b   : > { %v789_v35 = vmax.f32 %v744_v34, 0.0 }
 0x20d   : > { %840 = vmatmul.f32.gmra.mxu3 %v789_v35 }
 0x210   : > { %v746_v36 = vpop.f32.mrf.mxu2 }
 0x211   : > { %v747_v37 = vadd.f32 %v1299_v29, %v746_v36 }
 0x213   : > { %v790_v38 = vmax.f32 %v747_v37, 0.0 }
 0x215   : > { %843 = vmatmul.f32.gmra.mxu3 %v790_v38 }
 0x218   : > { %v749_v39 = vpop.f32.mrf.mxu2 }
 0x219   : > { %v750_v40 = vadd.f32 %v1299_v29, %v749_v39 }
 0x21b   : > { %v791_v41 = vmax.f32 %v750_v40, 0.0 }
 0x21d   : > { %846 = vmatmul.f32.gmra.mxu3 %v791_v41 }
 0x220   : > { %v752_v42 = vpop.f32.mrf.mxu2 }
 0x221   : > { %v753_v43 = vadd.f32 %v1299_v29, %v752_v42 }
 0x223   : > { %v792_v44 = vmax.f32 %v753_v43, 0.0 }
 0x225   : > { %849 = vmatmul.f32.gmra.mxu3 %v792_v44 }
 0x228   : > { %v755_v45 = vpop.f32.mrf.mxu2 }
 0x229   : > { %v756_v46 = vadd.f32 %v1299_v29, %v755_v45 }
 0x22b   : > { %v793_v47 = vmax.f32 %v756_v46, 0.0 }
 0x22d   : > { %852 = vmatmul.f32.gmra.mxu3 %v793_v47 }
 0x230   : > { %v758_v48 = vpop.f32.mrf.mxu2 }
 0x231   : > { %v759_v49 = vadd.f32 %v1299_v29, %v758_v48 }
 0x233   : > { %v794_v50 = vmax.f32 %v759_v49, 0.0 }
 0x235   : > { %855 = vmatmul.f32.gmra.mxu3 %v794_v50 }
 0x238   : > { %v761_v51 = vpop.f32.mrf.mxu2 }
 0x239   : > { %v762_v52 = vadd.f32 %v1299_v29, %v761_v51 }
 0x23b   : > { %v795_v53 = vmax.f32 %v762_v52, 0.0 }
 0x23d   : > { %858 = vmatmul.f32.gmra.mxu3 %v795_v53 }
 0x240   : > { %v764_v54 = vpop.f32.mrf.mxu2 }
 0x241   : > { %v765_v55 = vadd.f32 %v1299_v29, %v764_v54 }
 0x243   : > { %v796_v56 = vmax.f32 %v765_v55, 0.0 }
 0x245   : > { %861 = vmatmul.f32.gmra.mxu3 %v796_v56 }
 0x248   : > { %v767_v57 = vpop.f32.mrf.mxu2 }
 0x249   : > { %v768_v58 = vadd.f32 %v1299_v29, %v767_v57 }
 0x24b   : > { %v797_v59 = vmax.f32 %v768_v58, 0.0 }
 0x24d   : > { %864 = vmatmul.f32.gmra.mxu3 %v797_v59 }
 0x250   : > { %v770_v60 = vpop.f32.mrf.mxu2 }
 0x251   : > { %v771_v61 = vadd.f32 %v1299_v29, %v770_v60 }
 0x253   : > { %v798_v62 = vmax.f32 %v771_v61, 0.0 }
 0x255   : > { %867 = vmatmul.f32.gmra.mxu3 %v798_v62 }
 0x258   : > { %v773_v63 = vpop.f32.mrf.mxu2 }
 0x259   : > { %v774_v0 = vadd.f32 %v1299_v29, %v773_v63 }
 0x25b   : > { %v799_v1 = vmax.f32 %v774_v0, 0.0 }
 0x25d   : > { %870 = vmatmul.f32.gmra.mxu3 %v799_v1 }
 0x260   : > { %v776_v2 = vpop.f32.mrf.mxu2 }
 0x261   : > { %v777_v3 = vadd.f32 %v1299_v29, %v776_v2 }
 0x263   : > { %v800_v4 = vmax.f32 %v777_v3, 0.0 }
 0x265   : > { %873 = vmatmul.f32.gmra.mxu3 %v800_v4 }
 0x268   : > { %v779_v5 = vpop.f32.mrf.mxu2 }
 0x269   : > { %v780_v6 = vadd.f32 %v1299_v29, %v779_v5 }
 0x26b   : > { %v801_v7 = vmax.f32 %v780_v6, 0.0 }
 0x26d   : > { %876 = vmatmul.f32.gmra.mxu3 %v801_v7 }
 0x270   : > { %v782_v8 = vpop.f32.mrf.mxu2 }
 0x271   : > { %v783_v9 = vadd.f32 %v1299_v29, %v782_v8 }
 0x273   : > { %v802_v10 = vmax.f32 %v783_v9, 0.0 }
 0x275   : > { %879 = vmatmul.f32.gmra.mxu3 %v802_v10 }
 0x278   : > { %v785_v11 = vpop.f32.mrf.mxu2 }
 0x279   : > { %v786_v12 = vadd.f32 %v1299_v29, %v785_v11 }
 0x27b   : > { %v803_v13 = vmax.f32 %v786_v12, 0.0 }
 0x27d   : > { %882 = vmatmul.f32.gmra.mxu3 %v803_v13 }
 0x288   : > { %v838_v15 = vpop.f32.mrf.mxu3 }
 0x289   : > { %v839_v16 = vadd.f32 %v1300_v14, %v838_v15 }
 0x28b   : > { %886 = vmax.xlane.f32.xlu2 %v839_v16 }
 0x290   : > { %v841_v17 = vpop.f32.mrf.mxu3 }
 0x291   : > { %v842_v18 = vadd.f32 %v1300_v14, %v841_v17 }
 0x293   : > { %888 = vmax.xlane.f32.xlu0 %v842_v18 }
 0x298   : > { %v844_v19 = vpop.f32.mrf.mxu3 }
 0x299   : > { %v845_v20 = vadd.f32 %v1300_v14, %v844_v19 }
 0x29b   : > { %890 = vmax.xlane.f32.xlu1 %v845_v20 }
 0x2a0   : > { %v847_v21 = vpop.f32.mrf.mxu3 }
 0x2a1   : > { %v848_v22 = vadd.f32 %v1300_v14, %v847_v21 }
 0x2a3   : > { %892 = vmax.xlane.f32.xlu2 %v848_v22 }
 0x2a8   : > { %v850_v23 = vpop.f32.mrf.mxu3 }
 0x2a9   : > { %v851_v24 = vadd.f32 %v1300_v14, %v850_v23 }
 0x2ab   : > { %894 = vmax.xlane.f32.xlu2 %v851_v24 }
 0x2b0   : > { %v853_v25 = vpop.f32.mrf.mxu3 }
 0x2b1   : > { %v854_v26 = vadd.f32 %v1300_v14, %v853_v25 }
 0x2b3   : > { %896 = vmax.xlane.f32.xlu0 %v854_v26 }
 0x2b8   : > { %v856_v27 = vpop.f32.mrf.mxu3 }
 0x2b9   : > { %v1800_v28 = vadd.f32 %v1300_v14, %v856_v27 }
 0x2bb   : > { %898 = vmax.xlane.f32.xlu1 %v1800_v28 }
 0x2c0   : > { %v859_v29 = vpop.f32.mrf.mxu3 }
 0x2c1   : > { %v1803_v30 = vadd.f32 %v1300_v14, %v859_v29 }
 0x2c3   : > { %900 = vmax.xlane.f32.xlu2 %v1803_v30 }
 0x2c8   : > { %v862_v31 = vpop.f32.mrf.mxu3 }
 0x2c9   : > { %v1806_v32 = vadd.f32 %v1300_v14, %v862_v31 }
 0x2cb   : > { %902 = vmax.xlane.f32.xlu0 %v1806_v32 }
 0x2d0   : > { %v865_v33 = vpop.f32.mrf.mxu3 }
 0x2d1   : > { %v1809_v34 = vadd.f32 %v1300_v14, %v865_v33 }
 0x2d3   : > { %904 = vmax.xlane.f32.xlu1 %v1809_v34 }
 0x2d8   : > { %v868_v35 = vpop.f32.mrf.mxu3 }
 0x2d9   : > { %v1812_v36 = vadd.f32 %v1300_v14, %v868_v35 }
 0x2db   : > { %906 = vmax.xlane.f32.xlu2 %v1812_v36 }
 0x2e0   : > { %v871_v37 = vpop.f32.mrf.mxu3 }
 0x2e1   : > { %v1815_v38 = vadd.f32 %v1300_v14, %v871_v37 }
 0x2e3   : > { %908 = vmax.xlane.f32.xlu0 %v1815_v38 }
 0x2e8   : > { %v874_v39 = vpop.f32.mrf.mxu3 }
 0x2e9   : > { %v1818_v40 = vadd.f32 %v1300_v14, %v874_v39 }
 0x2eb   : > { %910 = vmax.xlane.f32.xlu1 %v1818_v40 }
 0x2f0   : > { %v877_v41 = vpop.f32.mrf.mxu3 }
 0x2f1   : > { %v1821_v42 = vadd.f32 %v1300_v14, %v877_v41 }
 0x2f3   : > { %912 = vmax.xlane.f32.xlu2 %v1821_v42 }
 0x2f8   : > { %v880_v43 = vpop.f32.mrf.mxu3 }
 0x2f9   : > { %v1824_v44 = vadd.f32 %v1300_v14, %v880_v43 }
 0x2fb   : > { %914 = vmax.xlane.f32.xlu0 %v1824_v44 }
 0x2fe   : > { %v887_v45 = vpop.xlane.xlu2 %886 }
 0x2ff   : > { %v1827_v46 = vsub.f32 %v839_v16, %v887_v45 }
 0x300   : > { %v883_v47 = vpop.f32.mrf.mxu3 }
 0x301   : > { %v934_v48 = vmul.f32 1.442695, %v1827_v46  ;;  %v1830_v49 = vadd.f32 %v1300_v14, %v883_v47 }
 0x303   : > { %1301 = vpow2.f32 %v934_v48  ;;  %916 = vmax.xlane.f32.xlu1 %v1830_v49 }
 0x306   : > { %v889_v50 = vpop.xlane.xlu0 %888 }
 0x307   : > { %v1833_v51 = vsub.f32 %v842_v18, %v889_v50 }
 0x309   : > { %v1302_v52 = vpop.eup %1301  ;;  %v936_v53 = vmul.f32 1.442695, %v1833_v51 }
 0x30a   : > { %966 = vadd.xlane.f32.xlu2 %v1302_v52 }
 0x30b   : > { %1303 = vpow2.f32 %v936_v53 }
 0x30e   : > { %v891_v54 = vpop.xlane.xlu1 %890 }
 0x30f   : > { %v1836_v55 = vsub.f32 %v845_v20, %v891_v54 }
 0x311   : > { %v1304_v56 = vpop.eup %1303  ;;  %v938_v57 = vmul.f32 1.442695, %v1836_v55 }
 0x312   : > { %968 = vadd.xlane.f32.xlu0 %v1304_v56 }
 0x313   : > { %1305 = vpow2.f32 %v938_v57 }
 0x316   : > { %v893_v58 = vpop.xlane.xlu2 %892 }
 0x317   : > { %v1839_v59 = vsub.f32 %v848_v22, %v893_v58 }
 0x319   : > { %v1306_v60 = vpop.eup %1305  ;;  %v940_v61 = vmul.f32 1.442695, %v1839_v59 }
 0x31a   : > { %970 = vadd.xlane.f32.xlu1 %v1306_v60 }
 0x31b   : > { %1307 = vpow2.f32 %v940_v61 }
 0x31e   : > { %v895_v62 = vpop.xlane.xlu2 %894 }
 0x31f   : > { %v1842_v63 = vsub.f32 %v851_v24, %v895_v62 }
 0x321   : > { %v1308_v0 = vpop.eup %1307  ;;  %v942_v1 = vmul.f32 1.442695, %v1842_v63 }
 0x322   : > { %972 = vadd.xlane.f32.xlu2 %v1308_v0 }
 0x323   : > { %1309 = vpow2.f32 %v942_v1 }
 0x326   : > { %v897_v2 = vpop.xlane.xlu0 %896 }
 0x327   : > { %v1845_v3 = vsub.f32 %v854_v26, %v897_v2 }
 0x329   : > { %v1310_v4 = vpop.eup %1309  ;;  %v944_v5 = vmul.f32 1.442695, %v1845_v3 }
 0x32a   : > { %974 = vadd.xlane.f32.xlu0 %v1310_v4 }
 0x32b   : > { %1311 = vpow2.f32 %v944_v5 }
 0x32e   : > { %v899_v6 = vpop.xlane.xlu1 %898 }
 0x32f   : > { %v1849_v7 = vsub.f32 %v1800_v28, %v899_v6 }
 0x331   : > { %v1312_v8 = vpop.eup %1311  ;;  %v946_v9 = vmul.f32 1.442695, %v1849_v7 }
 0x332   : > { %976 = vadd.xlane.f32.xlu1 %v1312_v8 }
 0x333   : > { %1313 = vpow2.f32 %v946_v9 }
 0x336   : > { %v901_v10 = vpop.xlane.xlu2 %900 }
 0x337   : > { %v1853_v11 = vsub.f32 %v1803_v30, %v901_v10 }
 0x339   : > { %v1314_v12 = vpop.eup %1313  ;;  %v948_v13 = vmul.f32 1.442695, %v1853_v11 }
 0x33a   : > { %978 = vadd.xlane.f32.xlu2 %v1314_v12 }
 0x33b   : > { %1315 = vpow2.f32 %v948_v13 }
 0x33e   : > { %v903_v14 = vpop.xlane.xlu0 %902 }
 0x33f   : > { %v1857_v15 = vsub.f32 %v1806_v32, %v903_v14 }
 0x341   : > { %v1316_v16 = vpop.eup %1315  ;;  %v950_v17 = vmul.f32 1.442695, %v1857_v15 }
 0x342   : > { %980 = vadd.xlane.f32.xlu0 %v1316_v16 }
 0x343   : > { %1317 = vpow2.f32 %v950_v17 }
 0x346   : > { %v905_v18 = vpop.xlane.xlu1 %904 }
 0x347   : > { %v1861_v19 = vsub.f32 %v1809_v34, %v905_v18 }
 0x349   : > { %v1318_v20 = vpop.eup %1317  ;;  %v952_v21 = vmul.f32 1.442695, %v1861_v19 }
 0x34a   : > { %982 = vadd.xlane.f32.xlu1 %v1318_v20 }
 0x34b   : > { %1319 = vpow2.f32 %v952_v21 }
 0x34e   : > { %v907_v22 = vpop.xlane.xlu2 %906 }
 0x34f   : > { %v1865_v23 = vsub.f32 %v1812_v36, %v907_v22 }
 0x351   : > { %v1320_v24 = vpop.eup %1319  ;;  %v954_v25 = vmul.f32 1.442695, %v1865_v23 }
 0x352   : > { %984 = vadd.xlane.f32.xlu2 %v1320_v24 }
 0x353   : > { %1321 = vpow2.f32 %v954_v25 }
 0x356   : > { %v909_v26 = vpop.xlane.xlu0 %908 }
 0x357   : > { %v1869_v27 = vsub.f32 %v1815_v38, %v909_v26 }
 0x359   : > { %v1322_v28 = vpop.eup %1321  ;;  %v956_v29 = vmul.f32 1.442695, %v1869_v27 }
 0x35a   : > { %986 = vadd.xlane.f32.xlu0 %v1322_v28 }
 0x35b   : > { %1323 = vpow2.f32 %v956_v29 }
 0x35e   : > { %v911_v30 = vpop.xlane.xlu1 %910 }
 0x35f   : > { %v1873_v31 = vsub.f32 %v1818_v40, %v911_v30 }
 0x361   : > { %v1324_v32 = vpop.eup %1323  ;;  %v958_v33 = vmul.f32 1.442695, %v1873_v31 }
 0x362   : > { %988 = vadd.xlane.f32.xlu1 %v1324_v32 }
 0x363   : > { %1325 = vpow2.f32 %v958_v33 }
 0x366   : > { %v913_v34 = vpop.xlane.xlu2 %912 }
 0x367   : > { %v1877_v35 = vsub.f32 %v1821_v42, %v913_v34 }
 0x369   : > { %v1326_v36 = vpop.eup %1325  ;;  %v960_v37 = vmul.f32 1.442695, %v1877_v35 }
 0x36a   : > { %990 = vadd.xlane.f32.xlu2 %v1326_v36 }
 0x36b   : > { %1327 = vpow2.f32 %v960_v37 }
 0x36e   : > { %v915_v38 = vpop.xlane.xlu0 %914 }
 0x36f   : > { %v1881_v39 = vsub.f32 %v1824_v44, %v915_v38 }
 0x371   : > { %v1328_v40 = vpop.eup %1327  ;;  %v962_v41 = vmul.f32 1.442695, %v1881_v39 }
 0x372   : > { %992 = vadd.xlane.f32.xlu0 %v1328_v40 }
 0x373   : > { %1329 = vpow2.f32 %v962_v41 }
 0x376   : > { %v917_v43 = vpop.xlane.xlu1 %916 }
 0x377   : > { %v1885_v42 = vsub.f32 %v1830_v49, %v917_v43 }
 0x379   : > { %v1330_v45 = vpop.eup %1329  ;;  %v964_v47 = vmul.f32 1.442695, %v1885_v42 }
 0x37a   : > { %994 = vadd.xlane.f32.xlu1 %v1330_v45 }
 0x37b   : > { %1331 = vpow2.f32 %v964_v47 }
 0x37d   : > { %v967_v48 = vpop.xlane.xlu2 %966 }
 0x37e   : > { %1333 = vlog2.f32 %v967_v48 }
 0x381   : > { %v1332_v44 = vpop.eup %1331 }
 0x382   : > { %996 = vadd.xlane.f32.xlu2 %v1332_v44 }
 0x384   : > { %v1334_v50 = vpop.eup %1333 }
 0x385   : > { %v999_v52 = vmul.f32 0.6931472, %v1334_v50  ;;  %v969_v53 = vpop.xlane.xlu0 %968 }
 0x386   : > { %1335 = vlog2.f32 %v969_v53 }
 0x387   : > { %v1030_v54 = vsub.f32 %v1827_v46, %v999_v52 }
 0x389   : > { %1046 = vst [vmem:[%s1892_s23] sm:$0xff] %v1030_v54 }
 0x38c   : > { %v1336_v49 = vpop.eup %1335 }
 0x38d   : > { %v1001_v56 = vmul.f32 0.6931472, %v1336_v49  ;;  %v971_v57 = vpop.xlane.xlu1 %970 }
 0x38e   : > { %1337 = vlog2.f32 %v971_v57 }
 0x38f   : > { %v1031_v58 = vsub.f32 %v1833_v51, %v1001_v56 }
 0x391   : > { %1047 = vst [vmem:[%s1892_s23 + $0x8] sm:$0xff] %v1031_v58 }
 0x394   : > { %v1338_v60 = vpop.eup %1337 }
 0x395   : > { %v1003_v61 = vmul.f32 0.6931472, %v1338_v60  ;;  %v973_v62 = vpop.xlane.xlu2 %972 }
 0x396   : > { %1339 = vlog2.f32 %v973_v62 }
 0x397   : > { %v1032_v46 = vsub.f32 %v1836_v55, %v1003_v61 }
 0x399   : > { %1048 = vst [vmem:[%s1892_s23 + $0x10] sm:$0xff] %v1032_v46 }
 0x39c   : > { %v1340_v0 = vpop.eup %1339 }
 0x39d   : > { %v1005_v1 = vmul.f32 0.6931472, %v1340_v0  ;;  %v975_v2 = vpop.xlane.xlu0 %974 }
 0x39e   : > { %1341 = vlog2.f32 %v975_v2 }
 0x39f   : > { %v1033_v4 = vsub.f32 %v1839_v59, %v1005_v1 }
 0x3a1   : > { %1049 = vst [vmem:[%s1892_s23 + $0x18] sm:$0xff] %v1033_v4 }
 0x3a4   : > { %v1342_v5 = vpop.eup %1341 }
 0x3a5   : > { %v1007_v6 = vmul.f32 0.6931472, %v1342_v5  ;;  %v977_v51 = vpop.xlane.xlu1 %976 }
 0x3a6   : > { %1343 = vlog2.f32 %v977_v51 }
 0x3a7   : > { %v1034_v8 = vsub.f32 %v1842_v63, %v1007_v6 }
 0x3a9   : > { %1050 = vst [vmem:[%s1892_s23 + $0x20] sm:$0xff] %v1034_v8 }
 0x3ac   : > { %v1344_v9 = vpop.eup %1343 }
 0x3ad   : > { %v1009_v10 = vmul.f32 0.6931472, %v1344_v9  ;;  %v979_v55 = vpop.xlane.xlu2 %978 }
 0x3ae   : > { %1345 = vlog2.f32 %v979_v55 }
 0x3af   : > { %v1035_v12 = vsub.f32 %v1845_v3, %v1009_v10 }
 0x3b1   : > { %1051 = vst [vmem:[%s1892_s23 + $0x28] sm:$0xff] %v1035_v12 }
 0x3b4   : > { %v1346_v13 = vpop.eup %1345 }
 0x3b5   : > { %v1011_v14 = vmul.f32 0.6931472, %v1346_v13  ;;  %v981_v59 = vpop.xlane.xlu0 %980 }
 0x3b6   : > { %1347 = vlog2.f32 %v981_v59 }
 0x3b7   : > { %v1036_v16 = vsub.f32 %v1849_v7, %v1011_v14 }
 0x3b9   : > { %1052 = vst [vmem:[%s1892_s23 + $0x30] sm:$0xff] %v1036_v16 }
 0x3bc   : > { %v1348_v17 = vpop.eup %1347 }
 0x3bd   : > { %v1013_v18 = vmul.f32 0.6931472, %v1348_v17  ;;  %v983_v63 = vpop.xlane.xlu1 %982 }
 0x3be   : > { %1349 = vlog2.f32 %v983_v63 }
 0x3bf   : > { %v1037_v20 = vsub.f32 %v1853_v11, %v1013_v18 }
 0x3c1   : > { %1053 = vst [vmem:[%s1892_s23 + $0x38] sm:$0xff] %v1037_v20 }
 0x3c4   : > { %v1350_v21 = vpop.eup %1349 }
 0x3c5   : > { %v1015_v22 = vmul.f32 0.6931472, %v1350_v21  ;;  %v985_v3 = vpop.xlane.xlu2 %984 }
 0x3c6   : > { %1351 = vlog2.f32 %v985_v3 }
 0x3c7   : > { %v1038_v24 = vsub.f32 %v1857_v15, %v1015_v22 }
 0x3c9   : > { %1054 = vst [vmem:[%s1892_s23 + $0x40] sm:$0xff] %v1038_v24 }
 0x3cc   : > { %v1352_v25 = vpop.eup %1351 }
 0x3cd   : > { %v1017_v26 = vmul.f32 0.6931472, %v1352_v25  ;;  %v987_v7 = vpop.xlane.xlu0 %986 }
 0x3ce   : > { %1353 = vlog2.f32 %v987_v7 }
 0x3cf   : > { %v1039_v28 = vsub.f32 %v1861_v19, %v1017_v26 }
 0x3d1   : > { %1055 = vst [vmem:[%s1892_s23 + $0x48] sm:$0xff] %v1039_v28 }
 0x3d4   : > { %v1354_v29 = vpop.eup %1353 }
 0x3d5   : > { %v1019_v30 = vmul.f32 0.6931472, %v1354_v29  ;;  %v989_v11 = vpop.xlane.xlu1 %988 }
 0x3d6   : > { %1355 = vlog2.f32 %v989_v11 }
 0x3d7   : > { %v1040_v32 = vsub.f32 %v1865_v23, %v1019_v30 }
 0x3d9   : > { %1056 = vst [vmem:[%s1892_s23 + $0x50] sm:$0xff] %v1040_v32 }
 0x3dc   : > { %v1356_v33 = vpop.eup %1355 }
 0x3dd   : > { %v1021_v34 = vmul.f32 0.6931472, %v1356_v33  ;;  %v991_v15 = vpop.xlane.xlu2 %990 }
 0x3de   : > { %1357 = vlog2.f32 %v991_v15 }
 0x3df   : > { %v1041_v36 = vsub.f32 %v1869_v27, %v1021_v34 }
 0x3e1   : > { %1057 = vst [vmem:[%s1892_s23 + $0x58] sm:$0xff] %v1041_v36 }
 0x3e4   : > { %v1358_v37 = vpop.eup %1357 }
 0x3e5   : > { %v1023_v19 = vmul.f32 0.6931472, %v1358_v37  ;;  %v993_v38 = vpop.xlane.xlu0 %992 }
 0x3e6   : > { %1359 = vlog2.f32 %v993_v38 }
 0x3e7   : > { %v1042_v40 = vsub.f32 %v1873_v31, %v1023_v19 }
 0x3e9   : > { %1058 = vst [vmem:[%s1892_s23 + $0x60] sm:$0xff] %v1042_v40 }
 0x3ec   : > { %v1360_v23 = vpop.eup %1359 }
 0x3ed   : > { %v1025_v41 = vmul.f32 0.6931472, %v1360_v23  ;;  %v995_v43 = vpop.xlane.xlu1 %994 }
 0x3ee   : > { %1361 = vlog2.f32 %v995_v43 }
 0x3ef   : > { %v1043_v45 = vsub.f32 %v1877_v35, %v1025_v41 }
 0x3f1   : > { %1059 = vst [vmem:[%s1892_s23 + $0x68] sm:$0xff] %v1043_v45 }
 0x3f4   : > { %v1362_v27 = vpop.eup %1361 }
 0x3f5   : > { %v1027_v47 = vmul.f32 0.6931472, %v1362_v27  ;;  %v997_v48 = vpop.xlane.xlu2 %996 }
 0x3f6   : > { %1363 = vlog2.f32 %v997_v48 }
 0x3f7   : > { %v1044_v44 = vsub.f32 %v1881_v39, %v1027_v47 }
 0x3f9   : > { %1060 = vst [vmem:[%s1892_s23 + $0x70] sm:$0xff] %v1044_v44 }
 0x3fc   : > { %v1364_v31 = vpop.eup %1363 }
 0x3fd   : > { %v1029_v35 = vmul.f32 0.6931472, %v1364_v31 }
 0x3ff   : > { %v1045_v50 = vsub.f32 %v1885_v42, %v1029_v35 }
 0x401   : > { %1061 = vst [vmem:[%s1892_s23 + $0x78] sm:$0xff] %v1045_v50 }
 0x402   : > { %1392 = shalt.err (!%p1389_p3)
}
 0x403   : > { %s1433_s16 = smov 128   ;;  %s1434_s17 = smov 8  }
 0x404   : > { %1233 = dma.vmem_to_hbm [thread:$0]  (%p1503_p5), %s1076_s7, 2048, %s1078_s8, %s1063_s22, %s1433_s16, %s1433_s16, %s1434_s17  }
 0x405 PF: > { %p1239_p4 = scmp.ge.s32.totalorder %s1427_s21, 2  ;;  %s1092_s23 = sand.u32 1, %s1415_s18  }
 0x406   : > { %s1093_s25 = scalar_lea.sflag [#allocation3], %s1092_s23 }
 0x407   : > { %p1236_p7 = pnand %p1239_p4, %p1507_p6 }
 0x409   : > { %p1237_p8 = pneg %p1236_p7 }
 0x40b   : > { %1410 = dma.done.wait (%p1237_p8), %s1093_s25, 2048  }
 0x40c   : > { %1412 = vsyncadd (%p1237_p8), %s1093_s25, 4294965248  ;;  %p15_p9 = scmp.ge.s32.totalorder %s1490_s24, 4   ;;  %s1967_s18 = smov %s1419_s19 }
 0x40d   : > { %s1968_s19 = smov %s1423_s20  ;;  %s1969_s20 = smov %s1501_s27 }
 0x40e   : > { %s1970_s21 = smov %s1490_s24  ;;  %17 = sbr.rel (!%p15_p9) target bundleno = 3 (0x3), region = 75 }
 0x413   :  { %1099 = vsyncpa [#allocation3], 1 }
 0x414   :  { %1101 = vsyncpa [#allocation3 + $0x1], 1 }

</bundles_post_ra>
